<compile_context>
chip_gen: v6e
topology: v6e:2x2x1
jax: 0.10.0
libtpu: 0.0.40
codegen_flags: <defaults>
</compile_context>

<pallas_src>
import jax
import jax.numpy as jnp
from jax.experimental import pallas as pl
from jax.experimental.pallas import tpu as pltpu


def critic_kernel(x_ref, w1_ref, b1_ref, w2_ref, b2_ref, w3_ref, b3_ref, o_ref):
    # linear1 + relu : MXU matmul with f32 accumulation, f32 elementwise.
    h1 = jnp.dot(x_ref[...], w1_ref[...], preferred_element_type=jnp.float32)
    h1 = jnp.maximum(h1 + b1_ref[...], 0.0)
    # linear2 + relu : cast the activation to the weight dtype only for the MXU
    # operands; bias-add / ReLU stay f32.
    h2 = jnp.dot(h1.astype(w2_ref.dtype), w2_ref[...],
                 preferred_element_type=jnp.float32)
    h2 = jnp.maximum(h2 + b2_ref[...], 0.0)
    # linear3 (out_features == 1): VPU multiply + lane reduction instead of a
    # 1-column MXU matmul; write the result lane-dense as a (1, TB) row.
    w3_row = w3_ref[...].astype(jnp.float32)                # (1, H2)
    v = jnp.sum(h2 * w3_row, axis=-1) + b3_ref[0, 0]        # (TB,)
    o_ref[...] = v.reshape(1, -1).astype(o_ref.dtype)


def critic_forward(state, params, *, block_b=512, compute_dtype=jnp.bfloat16):
    """state: (B, input_size) float32. Returns (B, 1) float32."""
    w1, b1, w2, b2, w3, b3 = params
    B, in_size = state.shape
    h1_size = w1.shape[1]
    h2_size = w2.shape[1]

    # Batch tile: multiple of 128 (lane-dense output rows), clamped so tiny
    # batches are not over-padded.  NOTE: at very small B a standalone Pallas
    # call is launch/DMA-setup bound; batch many states per call when possible.
    block_b = max(128, min(block_b, pl.cdiv(B, 128) * 128))
    num_tiles = pl.cdiv(B, block_b)
    b_pad = num_tiles * block_b
    if b_pad != B:
        state = jnp.pad(state, ((0, b_pad - B), (0, 0)))

    # bf16 (default) halves HBM traffic for state/weights; biases and the
    # output stay f32 and all accumulation is f32.
    x = state.astype(compute_dtype)
    w1c = w1.astype(compute_dtype)
    w2c = w2.astype(compute_dtype)
    w3_row = w3.reshape(1, h2_size).astype(compute_dtype)
    b1c = b1.astype(jnp.float32)
    b2c = b2.astype(jnp.float32)
    b3s = b3.reshape(1, 1).astype(jnp.float32)

    out_row = pl.pallas_call(
        critic_kernel,
        out_shape=jax.ShapeDtypeStruct((1, b_pad), jnp.float32),
        grid=(num_tiles,),
        in_specs=[
            # state: streamed / double-buffered batch tiles.
            pl.BlockSpec((block_b, in_size), lambda i: (i, 0)),
            # weights & biases: same block every step -> resident in VMEM.
            pl.BlockSpec((in_size, h1_size), lambda i: (0, 0)),
            pl.BlockSpec((1, h1_size), lambda i: (0, 0)),
            pl.BlockSpec((h1_size, h2_size), lambda i: (0, 0)),
            pl.BlockSpec((1, h2_size), lambda i: (0, 0)),
            pl.BlockSpec((1, h2_size), lambda i: (0, 0)),
            # b3 scalar rides in SMEM (no VMEM tile / vreg broadcast needed).
            pl.BlockSpec((1, 1), lambda i: (0, 0), memory_space=pltpu.SMEM),
        ],
        # Lane-dense output: each grid step writes one (1, TB) row.
        out_specs=pl.BlockSpec((1, block_b), lambda i: (0, i)),
        compiler_params=pltpu.CompilerParams(
            dimension_semantics=("parallel",)),
    )(x, w1c, b1c, w2c, b2c, w3_row, b3s)

    return out_row.reshape(b_pad, 1)[:B]


def init_params(key, input_size, hidden_size):
    """Deterministic init. Weights stored as (in, out); biases as (1, out)."""
    k1, k2, k3, k4, k5, k6 = jax.random.split(key, 6)
    h0, h1 = hidden_size
    w1 = jax.random.normal(k1, (input_size, h0), jnp.float32) * 0.1
    b1 = jax.random.normal(k2, (1, h0), jnp.float32) * 0.1
    w2 = jax.random.normal(k3, (h0, h1), jnp.float32) * 0.1
    b2 = jax.random.normal(k4, (1, h1), jnp.float32) * 0.1
    w3 = jax.random.normal(k5, (h1, 1), jnp.float32) * 0.1
    b3 = jax.random.normal(k6, (1, 1), jnp.float32) * 0.1
    return (w1, b1, w2, b2, w3, b3)


def critic_reference(state, params):
    w1, b1, w2, b2, w3, b3 = params
    h1 = jnp.maximum(state @ w1 + b1, 0.0)
    h2 = jnp.maximum(h1 @ w2 + b2, 0.0)
    return h2 @ w3 + b3


if __name__ == "__main__":
    key = jax.random.PRNGKey(0)
    B, input_size, hidden_size = 8, 32, (64, 32)

    k_x, k_p, k_x2 = jax.random.split(key, 3)
    state = jax.random.normal(k_x, (B, input_size), jnp.float32)
    params = init_params(k_p, input_size, hidden_size)
    ref = critic_reference(state, params)

    # 1) f32 path: tight correctness check against the pure-f32 reference.
    val_f32 = jax.block_until_ready(
        critic_forward(state, params, compute_dtype=jnp.float32))
    assert val_f32.shape == (B, 1)
    assert jnp.allclose(val_f32, ref, atol=1e-4, rtol=1e-4)

    # 2) bf16 path (default; halves HBM traffic): looser tolerance vs f32 ref.
    val_bf16 = jax.block_until_ready(critic_forward(state, params))
    assert val_bf16.shape == (B, 1)
    assert jnp.allclose(val_bf16, ref, atol=5e-2, rtol=5e-2)

    # 3) Multi-tile grid + remainder padding (B not a multiple of the tile).
    B2 = 300
    state2 = jax.random.normal(k_x2, (B2, input_size), jnp.float32)
    ref2 = critic_reference(state2, params)
    val2 = jax.block_until_ready(
        critic_forward(state2, params, block_b=128, compute_dtype=jnp.float32))
    assert val2.shape == (B2, 1)
    assert jnp.allclose(val2, ref2, atol=1e-4, rtol=1e-4)

    print("KERNEL_OK")
</pallas_src>

<mosaic_0001>
module attributes {stable_mosaic.version = 11 : i64} {
  func.func @critic_kernel(%arg0: i32, %arg1: memref<128x32xf32, #tpu.memory_space<vmem>>, %arg2: memref<32x64xf32, #tpu.memory_space<vmem>>, %arg3: memref<1x64xf32, #tpu.memory_space<vmem>>, %arg4: memref<64x32xf32, #tpu.memory_space<vmem>>, %arg5: memref<1x32xf32, #tpu.memory_space<vmem>>, %arg6: memref<1x32xf32, #tpu.memory_space<vmem>>, %arg7: memref<1x1xf32, #tpu.memory_space<smem>>, %arg8: memref<1x128xf32, #tpu.memory_space<vmem>>) attributes {dimension_semantics = [#tpu.dimension_semantics<parallel>], iteration_bounds = array<i64: 1>, scalar_prefetch = 0 : i64, scratch_operands = 0 : i64, tpu.core_type = #tpu.core_type<tc>, window_params = [{transform_indices = @transform_0, window_bounds = array<i64: 128, 32>}, {pipeline_mode = #tpu.pipeline_mode<synchronous>, transform_indices = @transform_1, window_bounds = array<i64: 32, 64>}, {pipeline_mode = #tpu.pipeline_mode<synchronous>, transform_indices = @transform_2, window_bounds = array<i64: 1, 64>}, {pipeline_mode = #tpu.pipeline_mode<synchronous>, transform_indices = @transform_3, window_bounds = array<i64: 64, 32>}, {pipeline_mode = #tpu.pipeline_mode<synchronous>, transform_indices = @transform_4, window_bounds = array<i64: 1, 32>}, {pipeline_mode = #tpu.pipeline_mode<synchronous>, transform_indices = @transform_5, window_bounds = array<i64: 1, 32>}, {transform_indices = @transform_6, window_bounds = array<i64: 1, 1>}, {transform_indices = @transform_7, window_bounds = array<i64: 1, 128>}]} {
    %c0 = arith.constant 0 : index
    %c0_0 = arith.constant 0 : index
    %0 = vector.load %arg1[%c0, %c0_0] : memref<128x32xf32, #tpu.memory_space<vmem>>, vector<128x32xf32>
    %c0_1 = arith.constant 0 : index
    %c0_2 = arith.constant 0 : index
    %1 = vector.load %arg2[%c0_1, %c0_2] : memref<32x64xf32, #tpu.memory_space<vmem>>, vector<32x64xf32>
    %cst = arith.constant dense<0.000000e+00> : vector<128x64xf32>
    %2 = tpu.matmul %0, %1, %cst {dimension_numbers = #tpu.dot_dimension_numbers<[1], [0], [0], [1], [0, 0, 1, 1], [], []>} : vector<128x32xf32>, vector<32x64xf32>, vector<128x64xf32> -> vector<128x64xf32>
    %c0_3 = arith.constant 0 : index
    %c0_4 = arith.constant 0 : index
    %3 = vector.load %arg3[%c0_3, %c0_4] : memref<1x64xf32, #tpu.memory_space<vmem>>, vector<1x64xf32>
    %4 = vector.broadcast %3 : vector<1x64xf32> to vector<128x64xf32>
    %5 = arith.addf %2, %4 : vector<128x64xf32>
    %cst_5 = arith.constant 0.000000e+00 : f32
    %6 = vector.broadcast %cst_5 : f32 to vector<128x64xf32>
    %7 = arith.maximumf %5, %6 : vector<128x64xf32>
    %c0_6 = arith.constant 0 : index
    %c0_7 = arith.constant 0 : index
    %8 = vector.load %arg4[%c0_6, %c0_7] : memref<64x32xf32, #tpu.memory_space<vmem>>, vector<64x32xf32>
    %cst_8 = arith.constant dense<0.000000e+00> : vector<128x32xf32>
    %9 = tpu.matmul %7, %8, %cst_8 {dimension_numbers = #tpu.dot_dimension_numbers<[1], [0], [0], [1], [0, 0, 1, 1], [], []>} : vector<128x64xf32>, vector<64x32xf32>, vector<128x32xf32> -> vector<128x32xf32>
    %c0_9 = arith.constant 0 : index
    %c0_10 = arith.constant 0 : index
    %10 = vector.load %arg5[%c0_9, %c0_10] : memref<1x32xf32, #tpu.memory_space<vmem>>, vector<1x32xf32>
    %11 = vector.broadcast %10 : vector<1x32xf32> to vector<128x32xf32>
    %12 = arith.addf %9, %11 : vector<128x32xf32>
    %cst_11 = arith.constant 0.000000e+00 : f32
    %13 = vector.broadcast %cst_11 : f32 to vector<128x32xf32>
    %14 = arith.maximumf %12, %13 : vector<128x32xf32>
    %c0_12 = arith.constant 0 : index
    %c0_13 = arith.constant 0 : index
    %15 = vector.load %arg6[%c0_12, %c0_13] : memref<1x32xf32, #tpu.memory_space<vmem>>, vector<1x32xf32>
    %16 = vector.broadcast %15 : vector<1x32xf32> to vector<128x32xf32>
    %17 = arith.mulf %14, %16 : vector<128x32xf32>
    %cst_14 = arith.constant dense<0.000000e+00> : vector<128xf32>
    %18 = vector.multi_reduction <add>, %17, %cst_14 [1] : vector<128x32xf32> to vector<128xf32>
    %c0_15 = arith.constant 0 : index
    %c0_16 = arith.constant 0 : index
    %19 = memref.load %arg7[%c0_15, %c0_16] : memref<1x1xf32, #tpu.memory_space<smem>>
    %20 = vector.broadcast %19 : f32 to vector<128xf32>
    %21 = arith.addf %18, %20 : vector<128xf32>
    %22 = vector.shape_cast %21 : vector<128xf32> to vector<1x128xf32>
    %c0_17 = arith.constant 0 : index
    %c0_18 = arith.constant 0 : index
    %23 = vector.load %arg8[%c0_17, %c0_18] : memref<1x128xf32, #tpu.memory_space<vmem>>, vector<1x128xf32>
    tpu.vector_store %arg8[%c0_17, %c0_18], %22 {strides = array<i32>} : memref<1x128xf32, #tpu.memory_space<vmem>>, vector<1x128xf32>,
    return
  }
  func.func @transform_0(%arg0: i32) -> (i32, i32) {
    %c0_i32 = arith.constant 0 : i32
    %c0_i32_0 = arith.constant 0 : i32
    return %arg0, %c0_i32 : i32, i32
  }
  func.func @transform_1(%arg0: i32) -> (i32, i32) {
    %c0_i32 = arith.constant 0 : i32
    %c0_i32_0 = arith.constant 0 : i32
    %c0_i32_1 = arith.constant 0 : i32
    return %c0_i32, %c0_i32_0 : i32, i32
  }
  func.func @transform_2(%arg0: i32) -> (i32, i32) {
    %c0_i32 = arith.constant 0 : i32
    %c0_i32_0 = arith.constant 0 : i32
    %c0_i32_1 = arith.constant 0 : i32
    return %c0_i32, %c0_i32_0 : i32, i32
  }
  func.func @transform_3(%arg0: i32) -> (i32, i32) {
    %c0_i32 = arith.constant 0 : i32
    %c0_i32_0 = arith.constant 0 : i32
    %c0_i32_1 = arith.constant 0 : i32
    return %c0_i32, %c0_i32_0 : i32, i32
  }
  func.func @transform_4(%arg0: i32) -> (i32, i32) {
    %c0_i32 = arith.constant 0 : i32
    %c0_i32_0 = arith.constant 0 : i32
    %c0_i32_1 = arith.constant 0 : i32
    return %c0_i32, %c0_i32_0 : i32, i32
  }
  func.func @transform_5(%arg0: i32) -> (i32, i32) {
    %c0_i32 = arith.constant 0 : i32
    %c0_i32_0 = arith.constant 0 : i32
    %c0_i32_1 = arith.constant 0 : i32
    return %c0_i32, %c0_i32_0 : i32, i32
  }
  func.func @transform_6(%arg0: i32) -> (i32, i32) {
    %c0_i32 = arith.constant 0 : i32
    %c0_i32_0 = arith.constant 0 : i32
    %c0_i32_1 = arith.constant 0 : i32
    return %c0_i32, %c0_i32_0 : i32, i32
  }
  func.func @transform_7(%arg0: i32) -> (i32, i32) {
    %c0_i32 = arith.constant 0 : i32
    %c0_i32_0 = arith.constant 0 : i32
    return %c0_i32, %arg0 : i32, i32
  }
}

</mosaic_0001>

<bundles_post_ra>
// kernel: tpu_custom_call.1
= control target key start
LH: loop header
LB: loop body
LE: loop exit
PB: predicated region body
PF: predicated region fallthrough
CT: control target
= control target key end

     0   :  { %vm55_vm0 = vcmask 261120   ;;  %s1190_s0 = inlined_call_operand.vmem [shape: f32[128,32], index: 0, kind: input, shape index: {}]   ;;  %s1191_s1 = inlined_call_operand.vmem [shape: f32[32,64], index: 1, kind: input, shape index: {}]   ;;  %s1192_s2 = inlined_call_operand.vmem [shape: f32[1,64], index: 2, kind: input, shape index: {}]   ;;  %s1193_s3 = inlined_call_operand.vmem [shape: f32[64,32], index: 3, kind: input, shape index: {}]   ;;  %s1194_s4 = inlined_call_operand.vmem [shape: f32[1,32], index: 4, kind: input, shape index: {}]   ;;  %s1195_s5 = inlined_call_operand.vmem [shape: f32[1,32], index: 5, kind: input, shape index: {}]   ;;  %s1196_s6 = inlined_call_operand.<no memory space> [shape: f32[1,1], index: 6, kind: input, shape index: {}]   ;;  %s1197_s7 = inlined_call_operand.hbm [shape: f32[1,128], index: 7, kind: output, shape index: {}]  }
   0x1   :  { %v47_v0 = vld [vmem:[%s1191_s1 + $0x18] sm:$0xff]  ;;  %v46_v1 = vld [vmem:[%s1191_s1 + $0x10] sm:$0xff]  ;;  %v28_v2 = vld [vmem:[%s1190_s0] sm:$0xff] }
   0x2   :  { %801 = vmatprep.subr.mxu0 %v47_v0  ;;  %v45_v3 = vld [vmem:[%s1191_s1 + $0x8] sm:$0xff]  ;;  %809 = vmatprep.mubr.msk.f32.mxu0 %vm55_vm0, %v28_v2  ;;  %v44_v4 = vld [vmem:[%s1191_s1] sm:$0xff]  ;;  %v272_v6 = vld [vmem:[%s1193_s3 + $0x38] sm:$0xff] }
   0x3   :  { %802 = vmatpush3.msra.mxu0 %v47_v0  ;;  %v29_v5 = vld [vmem:[%s1190_s0 + $0x8] sm:$0xff]  ;;  %v30_v7 = vld [vmem:[%s1190_s0 + $0x10] sm:$0xff]  ;;  %873 = vmatprep.subr.mxu1 %v272_v6 }
   0x4   :  { %803 = vmatprep.subr.mxu0 %v46_v1  ;;  %v271_v8 = vld [vmem:[%s1193_s3 + $0x30] sm:$0xff]  ;;  %881 = vmatpush3.msra.mxu1 %v272_v6 }
   0x5   :  { %804 = vmatpush3.msra.mxu0 %v46_v1 }
   0x6   :  { %805 = vmatprep.subr.mxu0 %v45_v3 }
   0x7   :  { %806 = vmatpush3.msra.mxu0 %v45_v3 }
   0x8   :  { %807 = vmatprep.subr.mxu0 %v44_v4 }
   0x9   :  { %808 = vmatpush3.msra.mxu0 %v44_v4 }
   0xa   :  { %13 = vsyncpa [#allocation4], 0  ;;  %810 = vmatmul.mubr.msk.f32.vlgmr.msra.gmra.mxu0 %vm55_vm0, %v29_v5  ;;  %833 = vmatprep.subr.mxu0 %v272_v6  ;;  %v31_v9 = vld [vmem:[%s1190_s0 + $0x18] sm:$0xff]  ;;  %v270_v10 = vld [vmem:[%s1193_s3 + $0x28] sm:$0xff]  ;;  %vm280_vm1 = vcmask 523264   ;;  %vm606_vm2 = vcmask 130112  }
   0xb   :  { %812 = vmatprep.mubr.msk.f32.mxu0 %vm55_vm0, %v30_v7  ;;  %834 = vmatpush3.msra.mxu0 %v272_v6  ;;  %v32_v11 = vld [vmem:[%s1190_s0 + $0x20] sm:$0xff]  ;;  %v33_v13 = vld [vmem:[%s1190_s0 + $0x28] sm:$0xff]  ;;  %v268_v14 = vld [vmem:[%s1193_s3 + $0x18] sm:$0xff]  ;;  %vm613_vm3 = vcmask 195712   ;;  %vm620_vm4 = vcmask 261312   ;;  %vm627_vm5 = vcmask 326912  }
   0xc   :  { %835 = vmatprep.subr.mxu0 %v271_v8  ;;  %874 = vmatprep.subr.mxu1 %v271_v8  ;;  %v269_v12 = vld [vmem:[%s1193_s3 + $0x20] sm:$0xff]  ;;  %v34_v15 = vld [vmem:[%s1190_s0 + $0x30] sm:$0xff]  ;;  %v35_v17 = vld [vmem:[%s1190_s0 + $0x38] sm:$0xff]  ;;  %vm634_vm6 = vcmask 392512   ;;  %vm641_vm7 = vcmask 458112   ;;  %vm648_vm8 = vcmask 523712  }
   0xd   :  { %836 = vmatpush3.msra.mxu0 %v271_v8  ;;  %882 = vmatpush3.msra.mxu1 %v271_v8  ;;  %v267_v16 = vld [vmem:[%s1193_s3 + $0x10] sm:$0xff]  ;;  %v36_v18 = vld [vmem:[%s1190_s0 + $0x40] sm:$0xff]  ;;  %v37_v19 = vld [vmem:[%s1190_s0 + $0x48] sm:$0xff]  ;;  %vm655_vm9 = vcmask 589312   ;;  %vm662_vm10 = vcmask 654912   ;;  %vm669_vm11 = vcmask 720512  }
   0xe   :  { %813 = vmatmul.mubr.msk.f32.gmra.mxu0 %vm55_vm0, %v31_v9  ;;  %837 = vmatprep.subr.mxu0 %v270_v10  ;;  %v38_v20 = vld [vmem:[%s1190_s0 + $0x50] sm:$0xff]  ;;  %v39_v21 = vld [vmem:[%s1190_s0 + $0x58] sm:$0xff]  ;;  %v40_v22 = vld [vmem:[%s1190_s0 + $0x60] sm:$0xff]  ;;  %vm676_vm12 = vcmask 786112   ;;  %vm683_vm13 = vcmask 851712   ;;  %vm690_vm14 = vcmask 917312  }
   0xf   :  { %815 = vmatprep.mubr.msk.f32.mxu0 %vm55_vm0, %v32_v11  ;;  %838 = vmatpush3.msra.mxu0 %v270_v10  ;;  %v41_v23 = vld [vmem:[%s1190_s0 + $0x68] sm:$0xff]  ;;  %v42_v24 = vld [vmem:[%s1190_s0 + $0x70] sm:$0xff]  ;;  %v43_v25 = vld [vmem:[%s1190_s0 + $0x78] sm:$0xff]  ;;  %vm697_vm15 = vcmask 982912  }
  0x10   :  { %839 = vmatprep.subr.mxu0 %v269_v12  ;;  %875 = vmatprep.subr.mxu1 %v270_v10  ;;  %v266_v26 = vld [vmem:[%s1193_s3 + $0x8] sm:$0xff]  ;;  %v265_v27 = vld [vmem:[%s1193_s3] sm:$0xff] }
  0x11   :  { %840 = vmatpush3.msra.mxu0 %v269_v12  ;;  %883 = vmatpush3.msra.mxu1 %v270_v10  ;;  %v722_v28 = vld [vmem:[%s1192_s2] ss:$0 sm:$0xff] }
  0x12   :  { %816 = vmatmul.mubr.msk.f32.gmra.mxu0 %vm55_vm0, %v33_v13  ;;  %841 = vmatprep.subr.mxu0 %v268_v14  ;;  %v1075_v13 = vld [vmem:[%s1194_s4] ss:$0 sm:$0xff] }
  0x13   :  { %818 = vmatprep.mubr.msk.f32.mxu0 %vm55_vm0, %v34_v15  ;;  %842 = vmatpush3.msra.mxu0 %v268_v14 }
  0x14   :  { %843 = vmatprep.subr.mxu0 %v267_v16  ;;  %876 = vmatprep.subr.mxu1 %v269_v12 }
  0x15   :  { %844 = vmatpush3.msra.mxu0 %v267_v16  ;;  %884 = vmatpush3.msra.mxu1 %v269_v12 }
  0x16   :  { %819 = vmatmul.mubr.msk.f32.gmra.mxu0 %vm55_vm0, %v35_v17  ;;  %877 = vmatprep.subr.mxu1 %v268_v14  ;;  %v1081_v17 = vld [vmem:[%s1195_s5] ss:$0 sm:$0xff] }
  0x17   :  { %821 = vmatprep.mubr.msk.f32.mxu0 %vm55_vm0, %v36_v18  ;;  %885 = vmatpush3.msra.mxu1 %v268_v14 }
  0x18   :  { %878 = vmatprep.subr.mxu1 %v267_v16  ;;  %845 = vmatprep.subr.mxu0 %v266_v26 }
  0x19   :  { %886 = vmatpush3.msra.mxu1 %v267_v16  ;;  %846 = vmatpush3.msra.mxu0 %v266_v26 }
  0x1a   :  { %822 = vmatmul.mubr.msk.f32.gmra.mxu0 %vm55_vm0, %v37_v19  ;;  %879 = vmatprep.subr.mxu1 %v266_v26 }
  0x1b   :  { %824 = vmatprep.mubr.msk.f32.mxu0 %vm55_vm0, %v38_v20  ;;  %887 = vmatpush3.msra.mxu1 %v266_v26 }
  0x1c   :  { %847 = vmatprep.subr.mxu0 %v265_v27  ;;  %880 = vmatprep.subr.mxu1 %v265_v27 }
  0x1d   :  { %848 = vmatpush3.msra.mxu0 %v265_v27  ;;  %888 = vmatpush3.msra.mxu1 %v265_v27 }
  0x1e   :  { %825 = vmatmul.mubr.msk.f32.gmra.mxu0 %vm55_vm0, %v39_v21 }
  0x1f   :  { %827 = vmatprep.mubr.msk.f32.mxu0 %vm55_vm0, %v40_v22 }
  0x22   :  { %828 = vmatmul.mubr.msk.f32.gmra.mxu0 %vm55_vm0, %v41_v23 }
  0x23   :  { %830 = vmatprep.mubr.msk.f32.mxu0 %vm55_vm0, %v42_v24 }
  0x26   :  { %831 = vmatmul.mubr.msk.f32.gmra.mxu0 %vm55_vm0, %v43_v25 }
  0xca   :  { %v811_v29 = vpop.f32.mrf.mxu0 }
  0xcb   :  { %v176_v30 = vadd.f32 %v811_v29, %v722_v28 }
  0xcc   :  { %v170_v31 = vpop.f32.mrf.mxu0 }
  0xcd   :  { %v171_v32 = vadd.f32 %v722_v28, %v170_v31  ;;  %v250_v35 = vmax.f32 %v176_v30, 0.0 }
  0xce   :  { %v814_v33 = vpop.f32.mrf.mxu0 }
  0xcf   :  { %v249_v34 = vmax.f32 %v171_v32, 0.0  ;;  %v186_v36 = vadd.f32 %v814_v33, %v722_v28 }
  0xd0   :  { %v180_v37 = vpop.f32.mrf.mxu0 }
  0xd1   :  { %v181_v38 = vadd.f32 %v722_v28, %v180_v37  ;;  %849 = vmatprep.mubr.msk.f32.mxu0 %vm280_vm1, %v249_v34  ;;  %v252_v41 = vmax.f32 %v186_v36, 0.0 }
  0xd2   :  { %v817_v39 = vpop.f32.mrf.mxu0  ;;  %850 = vmatmul.mubr.msk.f32.vlgmr.msra.gmra.mxu0 %vm280_vm1, %v250_v35 }
  0xd3   :  { %v251_v40 = vmax.f32 %v181_v38, 0.0  ;;  %v196_v42 = vadd.f32 %v817_v39, %v722_v28 }
  0xd4   :  { %v190_v43 = vpop.f32.mrf.mxu0 }
  0xd5   :  { %v191_v44 = vadd.f32 %v722_v28, %v190_v43  ;;  %852 = vmatprep.mubr.msk.f32.mxu1 %vm280_vm1, %v251_v40  ;;  %v254_v47 = vmax.f32 %v196_v42, 0.0 }
  0xd6   :  { %v820_v45 = vpop.f32.mrf.mxu0  ;;  %853 = vmatmul.mubr.msk.f32.vlgmr.msra.gmra.mxu1 %vm280_vm1, %v252_v41 }
  0xd7   :  { %v253_v46 = vmax.f32 %v191_v44, 0.0  ;;  %v206_v48 = vadd.f32 %v820_v45, %v722_v28 }
  0xd8   :  { %v200_v49 = vpop.f32.mrf.mxu0 }
  0xd9   :  { %v201_v50 = vadd.f32 %v722_v28, %v200_v49  ;;  %855 = vmatprep.mubr.msk.f32.mxu1 %vm280_vm1, %v253_v46  ;;  %v256_v53 = vmax.f32 %v206_v48, 0.0 }
  0xda   :  { %v823_v51 = vpop.f32.mrf.mxu0  ;;  %856 = vmatmul.mubr.msk.f32.gmra.mxu1 %vm280_vm1, %v254_v47 }
  0xdb   :  { %v255_v52 = vmax.f32 %v201_v50, 0.0  ;;  %v216_v54 = vadd.f32 %v823_v51, %v722_v28 }
  0xdc   :  { %v210_v55 = vpop.f32.mrf.mxu0 }
  0xdd   :  { %v211_v56 = vadd.f32 %v722_v28, %v210_v55  ;;  %858 = vmatprep.mubr.msk.f32.mxu1 %vm280_vm1, %v255_v52  ;;  %v258_v59 = vmax.f32 %v216_v54, 0.0 }
  0xde   :  { %v826_v57 = vpop.f32.mrf.mxu0  ;;  %859 = vmatmul.mubr.msk.f32.gmra.mxu1 %vm280_vm1, %v256_v53 }
  0xdf   :  { %v257_v58 = vmax.f32 %v211_v56, 0.0  ;;  %v226_v60 = vadd.f32 %v826_v57, %v722_v28 }
  0xe0   :  { %v220_v61 = vpop.f32.mrf.mxu0 }
  0xe1   :  { %v221_v62 = vadd.f32 %v722_v28, %v220_v61  ;;  %861 = vmatprep.mubr.msk.f32.mxu1 %vm280_vm1, %v257_v58  ;;  %v260_v1 = vmax.f32 %v226_v60, 0.0 }
  0xe2   :  { %v829_v63 = vpop.f32.mrf.mxu0  ;;  %862 = vmatmul.mubr.msk.f32.gmra.mxu1 %vm280_vm1, %v258_v59 }
  0xe3   :  { %v259_v0 = vmax.f32 %v221_v62, 0.0  ;;  %v236_v2 = vadd.f32 %v829_v63, %v722_v28 }
  0xe4   :  { %v230_v3 = vpop.f32.mrf.mxu0 }
  0xe5   :  { %v231_v4 = vadd.f32 %v722_v28, %v230_v3  ;;  %864 = vmatprep.mubr.msk.f32.mxu1 %vm280_vm1, %v259_v0  ;;  %v262_v7 = vmax.f32 %v236_v2, 0.0 }
  0xe6   :  { %v832_v5 = vpop.f32.mrf.mxu0  ;;  %865 = vmatmul.mubr.msk.f32.gmra.mxu1 %vm280_vm1, %v260_v1 }
  0xe7   :  { %v261_v6 = vmax.f32 %v231_v4, 0.0  ;;  %v246_v8 = vadd.f32 %v832_v5, %v722_v28 }
  0xe8   :  { %v240_v9 = vpop.f32.mrf.mxu0 }
  0xe9   :  { %v241_v10 = vadd.f32 %v722_v28, %v240_v9  ;;  %867 = vmatprep.mubr.msk.f32.mxu1 %vm280_vm1, %v261_v6  ;;  %v264_v12 = vmax.f32 %v246_v8, 0.0 }
  0xea   :  { %868 = vmatmul.mubr.msk.f32.gmra.mxu1 %vm280_vm1, %v262_v7 }
  0xeb   :  { %v263_v11 = vmax.f32 %v241_v10, 0.0 }
  0xed   :  { %870 = vmatprep.mubr.msk.f32.mxu1 %vm280_vm1, %v263_v11 }
  0xee   :  { %871 = vmatmul.mubr.msk.f32.gmra.mxu1 %vm280_vm1, %v264_v12 }
 0x192   :  { %v851_v14 = vpop.f32.mrf.mxu0 }
 0x193   :  { %v401_v15 = vadd.f32 %v851_v14, %v1075_v13 }
 0x194   :  { %v395_v16 = vpop.f32.mrf.mxu0 }
 0x195   :  { %v475_v18 = vmax.f32 %v401_v15, 0.0  ;;  %v396_v19 = vadd.f32 %v1075_v13, %v395_v16 }
 0x196   :  { %v854_v20 = vpop.f32.mrf.mxu1 }
 0x197   :  { %v474_v21 = vmax.f32 %v396_v19, 0.0  ;;  %v411_v22 = vadd.f32 %v854_v20, %v1075_v13  ;;  %v498_v23 = vmul.f32 %v1081_v17, %v475_v18 }
 0x198   :  { %v405_v24 = vpop.f32.mrf.mxu1 }
 0x199   :  { %v477_v25 = vmax.f32 %v411_v22, 0.0  ;;  %v406_v26 = vadd.f32 %v1075_v13, %v405_v24  ;;  %v516_v27 = vsel %vm55_vm0, %v498_v23, 0.0  ;;  %v497_v28 = vmul.f32 %v1081_v17, %v474_v21 }
 0x19a   :  { %v857_v29 = vpop.f32.mrf.mxu1  ;;  %517 = vadd.xlane.f32.xlu0 %v516_v27 }
 0x19b   :  { %v476_v30 = vmax.f32 %v406_v26, 0.0  ;;  %v421_v31 = vadd.f32 %v857_v29, %v1075_v13  ;;  %v500_v32 = vmul.f32 %v1081_v17, %v477_v25  ;;  %v513_v34 = vsel %vm55_vm0, %v497_v28, 0.0 }
 0x19c   :  { %v415_v33 = vpop.f32.mrf.mxu1 }
 0x19d   :  { %v479_v35 = vmax.f32 %v421_v31, 0.0  ;;  %v416_v36 = vadd.f32 %v1075_v13, %v415_v33  ;;  %v522_v37 = vsel %vm55_vm0, %v500_v32, 0.0  ;;  %v499_v38 = vmul.f32 %v1081_v17, %v476_v30 }
 0x19e   :  { %523 = vadd.xlane.f32.xlu1 %v522_v37  ;;  %v860_v39 = vpop.f32.mrf.mxu1  ;;  %514 = vadd.xlane.f32.xlu0 %v513_v34  ;;  %v595_v32 = vlaneseq  ;;  %v1138_v37 = vstv %s1196_s6  ;;  %s912_s6 = smov [#allocation3]  }
 0x19f   :  { %v478_v40 = vmax.f32 %v416_v36, 0.0  ;;  %v431_v41 = vadd.f32 %v860_v39, %v1075_v13  ;;  %v519_v43 = vsel %vm55_vm0, %v499_v38, 0.0  ;;  %v502_v47 = vmul.f32 %v1081_v17, %v479_v35  ;;  %s714_s12 = sshll.u32 %s912_s6, 4  ;;  %s715_s12 = int_to_ptr.vmem [resolvable:$true] %s714_s12 }
 0x1a0   :  { %v425_v42 = vpop.f32.mrf.mxu1  ;;  %v1130_v33 = vand.u32 127, %v595_v32  ;;  %v1132_v35 = vshrl.u32 %v595_v32, 7  ;;  %s890_s13 = scalar_lea.vmem %s715_s12, 16  ;;  %s894_s14 = scalar_lea.vmem %s715_s12, 32 }
 0x1a1   :  { %v481_v44 = vmax.f32 %v431_v41, 0.0  ;;  %v426_v45 = vadd.f32 %v1075_v13, %v425_v42  ;;  %v501_v46 = vmul.f32 %v1081_v17, %v478_v40  ;;  %v528_v56 = vsel %vm55_vm0, %v502_v47, 0.0  ;;  %p891_p0 = scmp.ne.s32.totalorder %s715_s12, %s890_s13  ;;  %p895_p1 = scmp.lt.s32.totalorder %s715_s12, %s715_s12 }
 0x1a2   :  { %v863_v48 = vpop.f32.mrf.mxu1  ;;  %520 = vadd.xlane.f32.xlu1 %v519_v43  ;;  %v601_v36 = vadd.s32 4294967288, %v1130_v33  ;;  %v615_v38 = vadd.s32 4294967272, %v1130_v33  ;;  %v599_v40 = vsub.s32 %v1130_v33, %v1132_v35  ;;  %v622_v43 = vadd.s32 4294967264, %v1130_v33  ;;  %p896_p2 = scmp.lt.s32.totalorder %s894_s14, %s890_s13 }
 0x1a3   :  { %v480_v49 = vmax.f32 %v426_v45, 0.0  ;;  %v441_v50 = vadd.f32 %v863_v48, %v1075_v13  ;;  %v525_v51 = vsel %vm55_vm0, %v501_v46, 0.0  ;;  %v504_v53 = vmul.f32 %v1081_v17, %v481_v44 }
 0x1a4   :  { %v435_v52 = vpop.f32.mrf.mxu1  ;;  %526 = vadd.xlane.f32.xlu0 %v525_v51  ;;  %v604_v44 = vsub.s32 %v601_v36, %v1132_v35  ;;  %v629_v47 = vadd.s32 4294967256, %v1130_v33  ;;  %v618_v48 = vsub.s32 %v615_v38, %v1132_v35  ;;  %v685_v32 = vadd.s32 4294967192, %v1130_v33  ;;  %p897_p3 = por %p896_p2, %p895_p1 }
 0x1a5   :  { %v483_v54 = vmax.f32 %v441_v50, 0.0  ;;  %v436_v55 = vadd.f32 %v1075_v13, %v435_v52  ;;  %v503_v57 = vmul.f32 %v1081_v17, %v480_v49  ;;  %v534_v63 = vsel %vm55_vm0, %v504_v53, 0.0 }
 0x1a6   :  { %v866_v58 = vpop.f32.mrf.mxu1  ;;  %529 = vadd.xlane.f32.xlu1 %v528_v56  ;;  %v625_v53 = vsub.s32 %v622_v43, %v1132_v35  ;;  %p898_p4 = pnand %p897_p3, %p891_p0 }
 0x1a7   :  { %v482_v59 = vmax.f32 %v436_v55, 0.0  ;;  %v451_v60 = vadd.f32 %v866_v58, %v1075_v13  ;;  %v531_v61 = vsel %vm55_vm0, %v503_v57, 0.0  ;;  %v506_v3 = vmul.f32 %v1081_v17, %v483_v54 }
 0x1a8   :  { %v445_v62 = vpop.f32.mrf.mxu1  ;;  %532 = vadd.xlane.f32.xlu0 %v531_v61  ;;  %v636_v54 = vadd.s32 4294967248, %v1130_v33 }
 0x1a9   :  { %v485_v0 = vmax.f32 %v451_v60, 0.0  ;;  %v446_v1 = vadd.f32 %v1075_v13, %v445_v62  ;;  %v505_v2 = vmul.f32 %v1081_v17, %v482_v59  ;;  %v540_v12 = vsel %vm55_vm0, %v506_v3, 0.0 }
 0x1aa   :  { %v869_v4 = vpop.f32.mrf.mxu1  ;;  %535 = vadd.xlane.f32.xlu1 %v534_v63  ;;  %v632_v59 = vsub.s32 %v629_v47, %v1132_v35  ;;  %v643_v60 = vadd.s32 4294967240, %v1130_v33 }
 0x1ab   :  { %v484_v5 = vmax.f32 %v446_v1, 0.0  ;;  %v461_v6 = vadd.f32 %v869_v4, %v1075_v13  ;;  %v537_v7 = vsel %vm55_vm0, %v505_v2, 0.0  ;;  %v508_v9 = vmul.f32 %v1081_v17, %v485_v0 }
 0x1ac   :  { %v455_v8 = vpop.f32.mrf.mxu1  ;;  %538 = vadd.xlane.f32.xlu0 %v537_v7  ;;  %v650_v0 = vadd.s32 4294967232, %v1130_v33  ;;  %v639_v4 = vsub.s32 %v636_v54, %v1132_v35  ;;  %v657_v7 = vadd.s32 4294967224, %v1130_v33 }
 0x1ad   :  { %v487_v10 = vmax.f32 %v461_v6, 0.0  ;;  %v456_v11 = vadd.f32 %v1075_v13, %v455_v8  ;;  %v507_v14 = vmul.f32 %v1081_v17, %v484_v5  ;;  %v546_v21 = vsel %vm55_vm0, %v508_v9, 0.0 }
 0x1ae   :  { %v872_v15 = vpop.f32.mrf.mxu1  ;;  %541 = vadd.xlane.f32.xlu1 %v540_v12 }
 0x1af   :  { %v486_v16 = vmax.f32 %v456_v11, 0.0  ;;  %v471_v18 = vadd.f32 %v872_v15, %v1075_v13  ;;  %v543_v19 = vsel %vm55_vm0, %v507_v14, 0.0  ;;  %v510_v25 = vmul.f32 %v1081_v17, %v487_v10 }
 0x1b0   :  { %v465_v20 = vpop.f32.mrf.mxu1  ;;  %544 = vadd.xlane.f32.xlu0 %v543_v19  ;;  %v646_v11 = vsub.s32 %v643_v60, %v1132_v35  ;;  %v653_v14 = vsub.s32 %v650_v0, %v1132_v35  ;;  %v664_v19 = vadd.s32 4294967216, %v1130_v33 }
 0x1b1   :  { %v489_v22 = vmax.f32 %v471_v18, 0.0  ;;  %v466_v23 = vadd.f32 %v1075_v13, %v465_v20  ;;  %v509_v24 = vmul.f32 %v1081_v17, %v486_v16  ;;  %v552_v28 = vsel %vm55_vm0, %v510_v25, 0.0 }
 0x1b2   :  { %547 = vadd.xlane.f32.xlu1 %v546_v21  ;;  %v660_v21 = vsub.s32 %v657_v7, %v1132_v35  ;;  %v671_v25 = vadd.s32 4294967208, %v1130_v33 }
 0x1b3   :  { %v488_v26 = vmax.f32 %v466_v23, 0.0  ;;  %v549_v27 = vsel %vm55_vm0, %v509_v24, 0.0  ;;  %v512_v30 = vmul.f32 %v1081_v17, %v489_v22 }
 0x1b4   :  { %550 = vadd.xlane.f32.xlu0 %v549_v27  ;;  %v678_v27 = vadd.s32 4294967200, %v1130_v33  ;;  %v674_v38 = vsub.s32 %v671_v25, %v1132_v35 }
 0x1b5   :  { %v511_v29 = vmul.f32 %v1081_v17, %v488_v26  ;;  %v558_v13 = vsel %vm55_vm0, %v512_v30, 0.0  ;;  %v608_v17 = vadd.s32 4294967280, %v1130_v33 }
 0x1b6   :  { %553 = vadd.xlane.f32.xlu1 %v552_v28 }
 0x1b7   :  { %v555_v31 = vsel %vm55_vm0, %v511_v29, 0.0  ;;  %v611_v46 = vsub.s32 %v608_v17, %v1132_v35  ;;  %vm704_vm0 = vcmask 1048512  }
 0x1b8   :  { %556 = vadd.xlane.f32.xlu0 %v555_v31  ;;  %v667_v31 = vsub.s32 %v664_v19, %v1132_v35 }
 0x1ba   :  { %559 = vadd.xlane.f32.xlu1 %v558_v13 }
 0x223   :  { %v518_v34 = vpop.xlane.xlu0 %517 }
 0x224   :  { %v564_v45 = vadd.f32 %v1138_v37, %v518_v34 }
 0x226   :  { %v605_v55 = vrot.slane %v564_v45, %v604_v44  ;;  %v692_v44 = vadd.s32 4294967184, %v1130_v33 }
 0x227   :  { %v524_v39 = vpop.xlane.xlu1 %523  ;;  %v515_v41 = vpop.xlane.xlu0 %514 }
 0x228   :  { %v563_v42 = vadd.f32 %v1138_v37, %v515_v41  ;;  %v566_v49 = vadd.f32 %v1138_v37, %v524_v39 }
 0x22a   :  { %v600_v50 = vrot.slane %v563_v42, %v599_v40  ;;  %v619_v61 = vrot.slane %v566_v49, %v618_v48  ;;  %v681_v40 = vsub.s32 %v678_v27, %v1132_v35 }
 0x22b   :  { %v521_v51 = vpop.xlane.xlu1 %520 }
 0x22c   :  { %v565_v52 = vadd.f32 %v1138_v37, %v521_v51  ;;  %v607_v62 = vsel %vm606_vm2, %v605_v55, %v600_v50  ;;  %v699_v50 = vadd.s32 4294967176, %v1130_v33  ;;  %v695_v55 = vsub.s32 %v692_v44, %v1132_v35 }
 0x22d   :  { %v527_v56 = vpop.xlane.xlu0 %526 }
 0x22e   :  { %v612_v57 = vrot.slane %v565_v52, %v611_v46  ;;  %v567_v58 = vadd.f32 %v1138_v37, %v527_v56  ;;  %v688_v46 = vsub.s32 %v685_v32, %v1132_v35  ;;  %v702_v60 = vsub.s32 %v699_v50, %v1132_v35 }
 0x22f   :  { %v530_v63 = vpop.xlane.xlu1 %529 }
 0x230   :  { %v614_v1 = vsel %vm613_vm3, %v612_v57, %v607_v62  ;;  %v626_v2 = vrot.slane %v567_v58, %v625_v53  ;;  %v568_v3 = vadd.f32 %v1138_v37, %v530_v63 }
 0x231   :  { %v621_v5 = vsel %vm620_vm4, %v619_v61, %v614_v1  ;;  %v533_v6 = vpop.xlane.xlu0 %532 }
 0x232   :  { %v628_v8 = vsel %vm627_vm5, %v626_v2, %v621_v5  ;;  %v633_v9 = vrot.slane %v568_v3, %v632_v59  ;;  %v569_v10 = vadd.f32 %v1138_v37, %v533_v6 }
 0x233   :  { %v536_v12 = vpop.xlane.xlu1 %535 }
 0x234   :  { %v635_v15 = vsel %vm634_vm6, %v633_v9, %v628_v8  ;;  %v640_v16 = vrot.slane %v569_v10, %v639_v4  ;;  %v570_v18 = vadd.f32 %v1138_v37, %v536_v12 }
 0x235   :  { %v539_v20 = vpop.xlane.xlu0 %538 }
 0x236   :  { %v642_v22 = vsel %vm641_vm7, %v640_v16, %v635_v15  ;;  %v647_v23 = vrot.slane %v570_v18, %v646_v11  ;;  %v571_v24 = vadd.f32 %v1138_v37, %v539_v20 }
 0x237   :  { %v542_v26 = vpop.xlane.xlu1 %541 }
 0x238   :  { %v649_v28 = vsel %vm648_vm8, %v647_v23, %v642_v22  ;;  %v654_v29 = vrot.slane %v571_v24, %v653_v14  ;;  %v572_v30 = vadd.f32 %v1138_v37, %v542_v26 }
 0x239   :  { %v545_v13 = vpop.xlane.xlu0 %544 }
 0x23a   :  { %v656_v34 = vsel %vm655_vm9, %v654_v29, %v649_v28  ;;  %v661_v36 = vrot.slane %v572_v30, %v660_v21  ;;  %v573_v17 = vadd.f32 %v1138_v37, %v545_v13 }
 0x23b   :  { %v548_v39 = vpop.xlane.xlu1 %547 }
 0x23c   :  { %v663_v41 = vsel %vm662_vm10, %v661_v36, %v656_v34  ;;  %v668_v42 = vrot.slane %v573_v17, %v667_v31  ;;  %v574_v43 = vadd.f32 %v1138_v37, %v548_v39 }
 0x23d   :  { %v551_v45 = vpop.xlane.xlu0 %550 }
 0x23e   :  { %v670_v47 = vsel %vm669_vm11, %v668_v42, %v663_v41  ;;  %v675_v48 = vrot.slane %v574_v43, %v674_v38  ;;  %v575_v49 = vadd.f32 %v1138_v37, %v551_v45 }
 0x23f   :  { %v554_v51 = vpop.xlane.xlu1 %553 }
 0x240   :  { %v677_v52 = vsel %vm676_vm12, %v675_v48, %v670_v47  ;;  %v682_v53 = vrot.slane %v575_v49, %v681_v40  ;;  %v576_v54 = vadd.f32 %v1138_v37, %v554_v51 }
 0x241   :  { %v557_v56 = vpop.xlane.xlu0 %556 }
 0x242   :  { %v684_v57 = vsel %vm683_vm13, %v682_v53, %v677_v52  ;;  %v689_v58 = vrot.slane %v576_v54, %v688_v46  ;;  %v577_v59 = vadd.f32 %v1138_v37, %v557_v56 }
 0x243   :  { %v560_v61 = vpop.xlane.xlu1 %559 }
 0x244   :  { %v696_v62 = vrot.slane %v577_v59, %v695_v55  ;;  %v578_v33 = vadd.f32 %v1138_v37, %v560_v61  ;;  %v691_v63 = vsel %vm690_vm14, %v689_v58, %v684_v57 }
 0x246   :  { %v703_v0 = vrot.slane %v578_v33, %v702_v60  ;;  %v698_v1 = vsel %vm697_vm15, %v696_v62, %v691_v63 }
 0x248   :  { %v705_v2 = vsel %vm704_vm0, %v703_v0, %v698_v1 }
 0x249   :  { %707 = vst [vmem:[#allocation3] sm:$0x1] %v705_v2 }
 0x24a   :  { %901 = shalt.err (!%p898_p4)
}
 0x24b   :  { %717 = dma.vmem_to_hbm [thread:$0]  %s715_s12, 16, %s1197_s7, [#allocation4]  }
 0x24c   :  { %910 = dma.done.wait [#allocation4], 16  }
 0x24d   :  { %911 = vsyncadd [#allocation4], 4294967280 }
 0x24e   :  { %721 = vsyncpa [#allocation4], 1 }

</bundles_post_ra>
